<compile_context>
chip_gen: v6e
topology: v6e:2x2x1
jax: 0.10.0
libtpu: 0.0.40
codegen_flags: <defaults>
</compile_context>

<pallas_src>
import jax
import jax.numpy as jnp
from jax.experimental import pallas as pl
from jax.experimental.pallas import tpu as pltpu


def _round_up(x, m):
    return ((x + m - 1) // m) * m


def _pad2(x, rows, cols):
    pr, pc = rows - x.shape[0], cols - x.shape[1]
    if pr or pc:
        x = jnp.pad(x, ((0, pr), (0, pc)))
    return x


def _pick_tile(dim, pref):
    """Largest power-of-two tile <= pref that divides dim (dim % 128 == 0)."""
    t = min(pref, dim)
    while dim % t:
        t //= 2
    return t


def _vmem_limit_bytes():
    """~75% of physical per-core VMEM; conservative 48 MiB if query fails."""
    try:
        cap = getattr(pltpu.get_tpu_info(), "vmem_capacity_bytes", None)
        if cap:
            return int(cap * 3 // 4)
    except Exception:
        pass
    return 48 * 2**20


def _matmul_bias_kernel(a_ref, b_ref, bias_ref, o_ref, acc_ref):
    """One (i, j, k) grid step of  out = a @ b + bias  (f32 accumulate)."""
    k = pl.program_id(2)

    @pl.when(k == 0)
    def _():
        # Fold the bias into the accumulator init (zeros row when no bias).
        acc_ref[...] = jnp.broadcast_to(bias_ref[...], acc_ref.shape)

    acc_ref[...] += jnp.dot(a_ref[...], b_ref[...],
                            preferred_element_type=jnp.float32)

    @pl.when(k == pl.num_programs(2) - 1)
    def _():
        o_ref[...] = acc_ref[...].astype(o_ref.dtype)


def _tiled_matmul(a, b, bias_row, out_dtype, *, pref_tile, vmem_limit):
    """Tiled (M,K)@(K,N)+bias on the MXU. a/b bf16, bias_row f32 (1, N)."""
    M, K = a.shape
    K2, N = b.shape
    assert K == K2

    tm = _pick_tile(M, pref_tile)
    tn = _pick_tile(N, pref_tile)
    tk = _pick_tile(K, pref_tile)
    # Keep both parallel grid axes busy (v7x has 2 TensorCores per chip).
    if (M // tm) * (N // tn) < 2 and tm > 128:
        tm //= 2

    grid = (M // tm, N // tn, K // tk)

    # NOTE: if profiling shows exposed DMA on the `a` stream (adjacency),
    # add pipeline_mode=pl.Buffered(3) to its BlockSpec (v7x).
    return pl.pallas_call(
        _matmul_bias_kernel,
        grid=grid,
        in_specs=[
            pl.BlockSpec((tm, tk), lambda i, j, k: (i, k)),
            pl.BlockSpec((tk, tn), lambda i, j, k: (k, j)),
            pl.BlockSpec((1, tn), lambda i, j, k: (0, j)),
        ],
        out_specs=pl.BlockSpec((tm, tn), lambda i, j, k: (i, j)),
        out_shape=jax.ShapeDtypeStruct((M, N), out_dtype),
        scratch_shapes=[pltpu.VMEM((tm, tn), jnp.float32)],
        compiler_params=pltpu.CompilerParams(
            dimension_semantics=("parallel", "parallel", "arbitrary"),
            vmem_limit_bytes=vmem_limit,
        ),
    )(a, b, bias_row)


def graph_convolution(inp, adj, weight, bias=None, *, pref_tile=256):
    """JAX/Pallas equivalent of GraphConvolution.forward(input, adj)."""
    N, f_in = inp.shape
    f_in_w, f_out = weight.shape
    assert f_in == f_in_w, "weight must be (in_features, out_features)"
    assert adj.shape == (N, N), "adj must be (N, N)"

    out_dtype = inp.dtype
    vmem_limit = _vmem_limit_bytes()

    # Zero-pad only to the next multiple of 128 (no-op when already aligned);
    # padding contributes exact zeros to both contractions.
    n_p = _round_up(N, 128)
    fi_p = _round_up(f_in, 128)
    fo_p = _round_up(f_out, 128)

    x_p = _pad2(inp.astype(jnp.bfloat16), n_p, fi_p)
    w_p = _pad2(weight.astype(jnp.bfloat16), fi_p, fo_p)
    a_p = _pad2(adj.astype(jnp.bfloat16), n_p, n_p)

    zero_bias = jnp.zeros((1, fo_p), jnp.float32)
    if bias is None:
        b_p = zero_bias
    else:
        b_p = _pad2(bias.astype(jnp.float32).reshape(1, f_out), 1, fo_p)

    # Pass 1: support = X @ W   (bf16 operands, f32 accumulate, bf16 to HBM).
    support = _tiled_matmul(x_p, w_p, zero_bias, jnp.bfloat16,
                            pref_tile=pref_tile, vmem_limit=vmem_limit)

    # Pass 2: out = adj @ support + bias  (bias folded into acc init).
    out_p = _tiled_matmul(a_p, support, b_p, out_dtype,
                          pref_tile=pref_tile, vmem_limit=vmem_limit)

    return out_p[:N, :f_out]


if __name__ == "__main__":
    key = jax.random.PRNGKey(0)
    k_x, k_a, k_w, k_b = jax.random.split(key, 4)

    # Small GCN-layer shapes: 256 nodes, in_features=32 -> out_features=64.
    N, F_IN, F_OUT = 256, 32, 64

    inp = jax.random.normal(k_x, (N, F_IN), dtype=jnp.float32)
    # Row-normalized random adjacency with self-loops (pygcn-style preprocessing).
    adj = (jax.random.uniform(k_a, (N, N)) < 0.05).astype(jnp.float32)
    adj = adj + jnp.eye(N, dtype=jnp.float32)
    adj = adj / jnp.sum(adj, axis=1, keepdims=True)

    stdv = 1.0 / (F_OUT ** 0.5)
    weight = jax.random.uniform(k_w, (F_IN, F_OUT), jnp.float32, -stdv, stdv)
    bias = jax.random.uniform(k_b, (F_OUT,), jnp.float32, -stdv, stdv)

    out = graph_convolution(inp, adj, weight, bias)
    out = jax.block_until_ready(out)

    ref = adj @ (inp @ weight) + bias
    assert out.shape == (N, F_OUT)
    err = float(jnp.max(jnp.abs(out - ref)))
    # bf16 MXU operands -> relaxed tolerance vs the f32 reference.
    assert jnp.allclose(out, ref, rtol=3e-2, atol=3e-2), err
    print("KERNEL_OK")
</pallas_src>

<mosaic_0001>
module attributes {stable_mosaic.version = 11 : i64} {
  func.func @_matmul_bias_kernel(%arg0: i32, %arg1: i32, %arg2: i32, %arg3: memref<128x128xbf16, #tpu.memory_space<vmem>>, %arg4: memref<128x128xbf16, #tpu.memory_space<vmem>>, %arg5: memref<1x128xf32, #tpu.memory_space<vmem>>, %arg6: memref<128x128xbf16, #tpu.memory_space<vmem>>, %arg7: memref<128x128xf32, #tpu.memory_space<vmem>>) attributes {dimension_semantics = [#tpu.dimension_semantics<parallel>, #tpu.dimension_semantics<parallel>, #tpu.dimension_semantics<arbitrary>], iteration_bounds = array<i64: 2, 1, 1>, scalar_prefetch = 0 : i64, scratch_operands = 1 : i64, tpu.core_type = #tpu.core_type<tc>, window_params = [{transform_indices = @transform_0, window_bounds = array<i64: 128, 128>}, {transform_indices = @transform_1, window_bounds = array<i64: 128, 128>}, {transform_indices = @transform_2, window_bounds = array<i64: 1, 128>}, {transform_indices = @transform_3, window_bounds = array<i64: 128, 128>}]} {
    %c0_i32 = arith.constant 0 : i32
    %0 = arith.cmpi eq, %arg2, %c0_i32 : i32
    %1 = arith.extui %0 : i1 to i32
    %c0_i32_0 = arith.constant 0 : i32
    %2 = arith.cmpi ne, %1, %c0_i32_0 : i32
    scf.if %2 {
      %c0_10 = arith.constant 0 : index
      %c0_11 = arith.constant 0 : index
      %12 = vector.load %arg5[%c0_10, %c0_11] : memref<1x128xf32, #tpu.memory_space<vmem>>, vector<1x128xf32>
      %13 = vector.shape_cast %12 : vector<1x128xf32> to vector<1x128xf32>
      %14 = vector.broadcast %13 : vector<1x128xf32> to vector<128x128xf32>
      %c0_12 = arith.constant 0 : index
      %c0_13 = arith.constant 0 : index
      %15 = vector.load %arg7[%c0_12, %c0_13] : memref<128x128xf32, #tpu.memory_space<vmem>>, vector<128x128xf32>
      tpu.vector_store %arg7[%c0_12, %c0_13], %14 {strides = array<i32>} : memref<128x128xf32, #tpu.memory_space<vmem>>, vector<128x128xf32>,
    } else {
    }
    %c0 = arith.constant 0 : index
    %c0_1 = arith.constant 0 : index
    %3 = vector.load %arg7[%c0, %c0_1] : memref<128x128xf32, #tpu.memory_space<vmem>>, vector<128x128xf32>
    %c0_2 = arith.constant 0 : index
    %c0_3 = arith.constant 0 : index
    %4 = vector.load %arg3[%c0_2, %c0_3] : memref<128x128xbf16, #tpu.memory_space<vmem>>, vector<128x128xbf16>
    %c0_4 = arith.constant 0 : index
    %c0_5 = arith.constant 0 : index
    %5 = vector.load %arg4[%c0_4, %c0_5] : memref<128x128xbf16, #tpu.memory_space<vmem>>, vector<128x128xbf16>
    %cst = arith.constant dense<0.000000e+00> : vector<128x128xf32>
    %6 = tpu.matmul %4, %5, %cst {dimension_numbers = #tpu.dot_dimension_numbers<[1], [0], [0], [1], [0, 0, 1, 1], [], []>} : vector<128x128xbf16>, vector<128x128xbf16>, vector<128x128xf32> -> vector<128x128xf32>
    %7 = arith.addf %3, %6 : vector<128x128xf32>
    %c0_6 = arith.constant 0 : index
    %c0_7 = arith.constant 0 : index
    %8 = vector.load %arg7[%c0_6, %c0_7] : memref<128x128xf32, #tpu.memory_space<vmem>>, vector<128x128xf32>
    tpu.vector_store %arg7[%c0_6, %c0_7], %7 {strides = array<i32>} : memref<128x128xf32, #tpu.memory_space<vmem>>, vector<128x128xf32>,
    %c0_i32_8 = arith.constant 0 : i32
    %9 = arith.cmpi eq, %arg2, %c0_i32_8 : i32
    %10 = arith.extui %9 : i1 to i32
    %c0_i32_9 = arith.constant 0 : i32
    %11 = arith.cmpi ne, %10, %c0_i32_9 : i32
    scf.if %11 {
      %c0_10 = arith.constant 0 : index
      %c0_11 = arith.constant 0 : index
      %12 = vector.load %arg7[%c0_10, %c0_11] : memref<128x128xf32, #tpu.memory_space<vmem>>, vector<128x128xf32>
      %13 = arith.truncf %12 : vector<128x128xf32> to vector<128x128xbf16>
      %c0_12 = arith.constant 0 : index
      %c0_13 = arith.constant 0 : index
      %14 = vector.load %arg6[%c0_12, %c0_13] : memref<128x128xbf16, #tpu.memory_space<vmem>>, vector<128x128xbf16>
      tpu.vector_store %arg6[%c0_12, %c0_13], %13 {strides = array<i32>} : memref<128x128xbf16, #tpu.memory_space<vmem>>, vector<128x128xbf16>,
    } else {
    }
    return
  }
  func.func @transform_0(%arg0: i32, %arg1: i32, %arg2: i32) -> (i32, i32) {
    %c0_i32 = arith.constant 0 : i32
    return %arg0, %arg2 : i32, i32
  }
  func.func @transform_1(%arg0: i32, %arg1: i32, %arg2: i32) -> (i32, i32) {
    %c0_i32 = arith.constant 0 : i32
    return %arg2, %arg1 : i32, i32
  }
  func.func @transform_2(%arg0: i32, %arg1: i32, %arg2: i32) -> (i32, i32) {
    %c0_i32 = arith.constant 0 : i32
    %c0_i32_0 = arith.constant 0 : i32
    return %c0_i32, %arg1 : i32, i32
  }
  func.func @transform_3(%arg0: i32, %arg1: i32, %arg2: i32) -> (i32, i32) {
    %c0_i32 = arith.constant 0 : i32
    return %arg0, %arg1 : i32, i32
  }
}

</mosaic_0001>

<bundles_post_ra>
// kernel: tpu_custom_call.1
= control target key start
LH: loop header
LB: loop body
LE: loop exit
PB: predicated region body
PF: predicated region fallthrough
CT: control target
= control target key end

     0   :  { %8 = vsyncpa [#allocation4], 0  ;;  %s1440_s0 = inlined_call_operand.hbm [shape: bf16[256,128], index: 0, kind: input, shape index: {}]   ;;  %s1441_s1 = inlined_call_operand.hbm [shape: bf16[128,128], index: 1, kind: input, shape index: {}]   ;;  %s1442_s2 = inlined_call_operand.vmem [shape: f32[1,128], index: 2, kind: input, shape index: {}]   ;;  %s1443_s3 = inlined_call_operand.hbm [shape: bf16[256,128], index: 3, kind: output, shape index: {}]  }
   0x1   :  { %10 = vsyncpa [#allocation4 + $0x1], 0 }
   0x2   :  { %11 = vsyncpa [#allocation7], 0 }
   0x3   :  { %12 = vsyncpa [#allocation5], 0 }
   0x4   :  { %14 = vsyncpa [#allocation5 + $0x1], 0  ;;  %s1225_s12 = smov 0   ;;  %s1227_s13 = smov 0  }
   0x5   :  { %s1229_s14 = smov 0   ;;  %s1231_s15 = smov 0  }
   0x6   :  { %s1233_s16 = smov 0   ;;  %s1235_s17 = smov 0  }
   0x7 LB: > { %s785_s18 = sadd.s32 4294967295, %s1196_s17   ;;  %s786_s19 = sadd.s32 4294967294, %s1196_s17   ;;  %s1196_s17 = sphi %s1235_s17, %s20_s17   ;;  %s1192_s16 = sphi %s1233_s16, %s1465_s16   ;;  %s1188_s15 = sphi %s1231_s15, %s1464_s15   ;;  %s1184_s14 = sphi %s1229_s14, %s1463_s14   ;;  %s1180_s13 = sphi %s1227_s13, %s1462_s13   ;;  %s1176_s12 = sphi %s1225_s12, %s1461_s12  }
   0x8   : > { %p61_p0 = scmp.ne.s32.totalorder %s1180_s13, %s1176_s12  ;;  %p1259_p1 = scmp.eq.s32.totalorder %s785_s18, 0 }
   0x9   : > { %p1263_p2 = scmp.eq.s32.totalorder %s785_s18, 1  ;;  %p147_p3 = scmp.eq.s32.totalorder %s786_s19, 1 }
   0xa   : > { %p1269_p4 = por %p1259_p1, %p61_p0  ;;  %p787_p5 = scmp.ge.s32.totalorder %s1196_s17, 1 }
   0xb   : > { %p1274_p6 = por %p147_p3, %p61_p0  ;;  %p154_p7 = scmp.lt.s32.totalorder %s1196_s17, 3 }
   0xc   : > { %s1449_s22 = scalar_select %p1269_p4, 1, 0 }
   0xd   : > { %s1450_s23 = scalar_select %p1274_p6, 1, 0 }
   0xe   : > { %p1279_p8 = pnand %p787_p5, %p154_p7  ;;  %s1198_s25 = smov [#allocation6]  }
   0xf   : > { %s170_s26 = sshll.u32 %s1198_s25, 4  ;;  %s39_s28 = sadd.s32 1, %s1192_s16  ;;  %s171_s26 = int_to_ptr.vmem [resolvable:$true] %s170_s26 }
  0x10   : > { %p973_p9 = pneg %p1279_p8  ;;  %s1069_s29 = scalar_lea.vmem %s171_s26, 1024 }
  0x11   : > { %p1070_p13 = scmp.ne.s32.totalorder %s171_s26, %s1069_s29  ;;  %p1077_p5 = scmp.lt.s32.totalorder %s171_s26, %s171_s26 }
  0x12   : > { %p1288_p11 = pnand %p973_p9, %p1259_p1  ;;  %p1078_p7 = scmp.lt.s32.totalorder %s1069_s29, %s1069_s29 }
  0x14   : > { %p1060_p12 = pneg %p1288_p11  ;;  %p1079_p6 = por %p1078_p7, %p1077_p5 }
  0x16   : > { %p1072_p0 = pnand %p1070_p13, %p1060_p12 }
  0x18   : > { %p1073_p3 = pneg %p1072_p0 }
  0x1a   : > { %p1080_p4 = pnand %p1079_p6, %p1073_p3 }
  0x1c   : > { %1083 = shalt.err (!%p1080_p4)
}
  0x1d   : > { %s1445_s30 = smov 64   ;;  %s1446_s4 = smov 4  }
  0x1e   : > { %976 = dma.hbm_to_vmem [thread:$0]  (!%p1288_p11), %s1441_s1, 1024, %s171_s26, [#allocation7], %s1445_s30, %s1445_s30, %s1446_s4  }
  0x1f   : > { %p41_p4 = scmp.ge.s32.totalorder %s39_s28, 2  ;;  %s48_s7 = sadd.s32 1, %s1184_s14 }
  0x20   : > { %p55_p6 = scmp.ne.s32.totalorder %s1184_s14, %s1180_s13  ;;  %p56_p9 = scmp.eq.s32.totalorder %s1196_s17, 0 }
  0x21   : > { %s1467_s28 = smov (%p41_p4, %s39_s28), 0  ;;  %p986_p0 = scmp.lt.s32.totalorder %s1196_s17, 2 }
  0x22   : > { %p1309_p12 = por %p56_p9, %p55_p6  ;;  %p1315_p13 = por %p1263_p2, %p55_p6 }
  0x23   : > { %s43_s10 = ssub.s32 %s1192_s16, %s1467_s28  ;;  %s190_s11 = sand.u32 1, %s1184_s14  }
  0x24   : > { %p46_p11 = scmp.eq.s32.totalorder %s43_s10, 0  ;;  %s791_s18 = sshll.u32 %s190_s11, 6 }
  0x25   : > { %s836_s25 = sshll.u32 %s1192_s16, 10  ;;  %s194_s5 = scalar_lea.vmem [#allocation3], %s791_s18 }
  0x26   : > { %s1324_s19 = scalar_select %p46_p11, %s1184_s14, %s48_s7  }
  0x27   : > { %s201_s29 = scalar_lea.hbm %s1440_s0, %s836_s25  ;;  %s202_s6 = sshll.u32 %s194_s5, 4  ;;  %s203_s6 = int_to_ptr.vmem [resolvable:$true] %s202_s6 }
  0x28   : > { %p1332_p2 = pnand %p986_p0, %p1309_p12  ;;  %s191_s30 = scalar_lea.sflag [#allocation4], %s190_s11 }
  0x29   : > { %s1097_s10 = scalar_lea.vmem %s203_s6, 1024  ;;  %s1201_s7 = smov [#allocation3]  }
  0x2a   : > { %p1086_p3 = pneg %p1332_p2  ;;  %p1098_p5 = scmp.ne.s32.totalorder %s203_s6, %s1097_s10 }
  0x2b   : > { %s1102_s4 = sshll.u32 %s1201_s7, 4  ;;  %s1103_s4 = int_to_ptr.vmem [resolvable:$false] %s1102_s4 }
  0x2c   : > { %p1100_p7 = pnand %p1098_p5, %p1086_p3  ;;  %s1104_s25 = scalar_lea.vmem %s1103_s4, 2048 }
  0x2d   : > { %p1105_p6 = scmp.lt.s32.totalorder %s203_s6, %s1103_s4  ;;  %p1106_p9 = scmp.lt.s32.totalorder %s1104_s25, %s1097_s10 }
  0x2e   : > { %p1101_p4 = pneg %p1100_p7 }
  0x2f   : > { %p1107_p11 = por %p1106_p9, %p1105_p6 }
  0x31   : > { %p1108_p10 = pnand %p1107_p11, %p1101_p4 }
  0x33   : > { %1111 = shalt.err (!%p1108_p10)
}
  0x34   : > { %s1456_s8 = smov 4   ;;  %s1457_s18 = smov 64  }
  0x35   : > { %980 = dma.hbm_to_vmem [thread:$0]  (!%p1332_p2), %s201_s29, 1024, %s203_s6, %s191_s30, %s1457_s18, %s1457_s18, %s1456_s8  }
  0x36   : > { %214 = sbr.rel (%p1279_p8) target bundleno = 320 (0x140), region = 32  ;;  %s1346_s11 = sand.u32 (!%p1279_p8), 1, %s1180_s13  }
  0x37   : > { %s795_s4 = sshll.u32 (!%p1279_p8), %s1346_s11, 6  ;;  %s217_s26 = scalar_lea.sflag (!%p1279_p8), [#allocation4], %s1346_s11 }
  0x38   : > { %s1352_s27 = scalar_lea.vmem (!%p1279_p8), [#allocation3], %s795_s4  ;;  %p1458_p10 = scmp.ne.s32.totalorder (!%p1279_p8), %s1449_s22, 0 }
  0x3b   : > { %1163 = dma.done.wait (%p1458_p10), %s217_s26, 1024  }
  0x3c   : > { %1165 = vsyncadd (%p1458_p10), %s217_s26, 4294966272 }
  0x3d   : > { %1167 = dma.done.wait (%p1259_p1), [#allocation7], 1024  }
  0x3e   : > { %1169 = vsyncadd (%p1259_p1), [#allocation7], 4294966272  ;;  %v1042_v0 = vld [vmem:[#allocation6 + $0x38] sm:$0xff]   ;;  %v1043_v1 = vld [vmem:[#allocation6 + $0x30] sm:$0xff]   ;;  %s1375_s24 = scalar_lea.vmem [#allocation8], %s795_s4  ;;  %s853_s29 = sshll.u32 %s1188_s15, 10 }
  0x3f   : > { %917 = vmatprep.subr.bf16.mxu0 %v1042_v0  ;;  %949 = vmatprep.subr.bf16.mxu1 %v1042_v0  ;;  %v1044_v2 = vld [vmem:[#allocation6 + $0x28] sm:$0xff]   ;;  %v1045_v3 = vld [vmem:[#allocation6 + $0x20] sm:$0xff]   ;;  %v1046_v6 = vld [vmem:[#allocation6 + $0x18] sm:$0xff]   ;;  %s671_s30 = sshll.u32 %s1375_s24, 4  ;;  %s1388_s21 = scalar_lea.hbm %s1443_s3, %s853_s29  ;;  %s1383_s30 = int_to_ptr.vmem [resolvable:$true] %s671_s30 }
  0x40   : > { %918 = vmatpush3.bf16.msra.mxu0 %v1042_v0  ;;  %957 = vmatpush3.bf16.msra.mxu1 %v1042_v0  ;;  %v1050_v4 = vld [vmem:[%s1352_s27] sm:$0xff]   ;;  %v1047_v7 = vld [vmem:[#allocation6 + $0x10] sm:$0xff]   ;;  %v1048_v8 = vld [vmem:[#allocation6 + $0x8] sm:$0xff]   ;;  %s657_s15 = scalar_lea.sflag [#allocation5], %s1346_s11  ;;  %s1112_s10 = scalar_lea.vmem %s1383_s30, 1024 }
  0x41   : > { %919 = vmatprep.subr.bf16.mxu0 %v1043_v1  ;;  %950 = vmatprep.subr.bf16.mxu1 %v1043_v1  ;;  %v1051_v5 = vld [vmem:[%s1352_s27 + $0x20] sm:$0xff]   ;;  %v1052_v10 = vld [vmem:[%s1352_s27 + $0x8] sm:$0xff]   ;;  %v1054_v12 = vld [vmem:[%s1352_s27 + $0x10] sm:$0xff]   ;;  %p1113_p1 = scmp.ne.s32.totalorder %s1383_s30, %s1112_s10  ;;  %s1202_s7 = smov [#allocation8]  }
  0x42   : > { %933 = vmatprep.mubr.bf16.mxu0 %v1050_v4  ;;  %941 = vmatprep.mubr.bf16.mxu1 %v1051_v5  ;;  %v1049_v9 = vld [vmem:[#allocation6] sm:$0xff]   ;;  %v1053_v11 = vld [vmem:[%s1352_s27 + $0x28] sm:$0xff]   ;;  %v1055_v13 = vld [vmem:[%s1352_s27 + $0x30] sm:$0xff]   ;;  %s1116_s25 = sshll.u32 %s1202_s7, 4  ;;  %s1117_s25 = int_to_ptr.vmem [resolvable:$false] %s1116_s25 }
  0x43   : > { %v1056_v14 = vld [vmem:[%s1352_s27 + $0x18] sm:$0xff]   ;;  %v798_v18 = vld [vmem:[%s1442_s2] ss:$0 sm:$0xff]  ;;  %p1114_p8 = pnand %p1113_p1, %p1315_p13  ;;  %s1118_s8 = scalar_lea.vmem %s1117_s25, 2048 }
  0x44   : > { %920 = vmatpush3.bf16.msra.mxu0 %v1043_v1  ;;  %958 = vmatpush3.bf16.msra.mxu1 %v1043_v1  ;;  %v1057_v15 = vld [vmem:[%s1352_s27 + $0x38] sm:$0xff]   ;;  %p1119_p0 = scmp.lt.s32.totalorder %s1383_s30, %s1117_s25  ;;  %p1120_p2 = scmp.lt.s32.totalorder %s1118_s8, %s1112_s10 }
  0x45   : > { %921 = vmatprep.subr.bf16.mxu0 %v1044_v2  ;;  %951 = vmatprep.subr.bf16.mxu1 %v1044_v2  ;;  %p1115_p12 = pneg %p1114_p8 }
  0x46   : > { %p1121_p3 = por %p1120_p2, %p1119_p0 }
  0x48   : > { %922 = vmatpush3.bf16.msra.mxu0 %v1044_v2  ;;  %959 = vmatpush3.bf16.msra.mxu1 %v1044_v2  ;;  %p1122_p5 = pnand %p1121_p3, %p1115_p12 }
  0x49   : > { %923 = vmatprep.subr.bf16.mxu0 %v1045_v3  ;;  %952 = vmatprep.subr.bf16.mxu1 %v1045_v3 }
  0x4c   : > { %924 = vmatpush3.bf16.msra.mxu0 %v1045_v3  ;;  %960 = vmatpush3.bf16.msra.mxu1 %v1045_v3 }
  0x4d   : > { %925 = vmatprep.subr.bf16.mxu0 %v1046_v6  ;;  %953 = vmatprep.subr.bf16.mxu1 %v1046_v6 }
  0x50   : > { %926 = vmatpush3.bf16.msra.mxu0 %v1046_v6  ;;  %961 = vmatpush3.bf16.msra.mxu1 %v1046_v6 }
  0x51   : > { %927 = vmatprep.subr.bf16.mxu0 %v1047_v7  ;;  %954 = vmatprep.subr.bf16.mxu1 %v1047_v7 }
  0x54   : > { %928 = vmatpush3.bf16.msra.mxu0 %v1047_v7  ;;  %962 = vmatpush3.bf16.msra.mxu1 %v1047_v7 }
  0x55   : > { %929 = vmatprep.subr.bf16.mxu0 %v1048_v8  ;;  %955 = vmatprep.subr.bf16.mxu1 %v1048_v8 }
  0x58   : > { %930 = vmatpush3.bf16.msra.mxu0 %v1048_v8  ;;  %963 = vmatpush3.bf16.msra.mxu1 %v1048_v8 }
  0x59   : > { %931 = vmatprep.subr.bf16.mxu0 %v1049_v9  ;;  %956 = vmatprep.subr.bf16.mxu1 %v1049_v9 }
  0x5c   : > { %932 = vmatpush3.bf16.msra.mxu0 %v1049_v9  ;;  %964 = vmatpush3.bf16.msra.mxu1 %v1049_v9 }
  0x5f   : > { %934 = vmatmul.mubr.bf16.vlgmr.msra.gmra.mxu0 %v1052_v10  ;;  %942 = vmatmul.mubr.bf16.vlgmr.msra.gmra.mxu1 %v1053_v11 }
  0x60   : > { %937 = vmatprep.mubr.bf16.mxu0 %v1054_v12  ;;  %945 = vmatprep.mubr.bf16.mxu1 %v1055_v13 }
  0x67   : > { %938 = vmatmul.mubr.bf16.gmra.mxu0 %v1056_v14  ;;  %946 = vmatmul.mubr.bf16.gmra.mxu1 %v1057_v15 }
 0x11f   : > { %v935_v16 = vpop.f32.mrf.mxu0  ;;  %v943_v17 = vpop.f32.mrf.mxu1 }
 0x120   : > { %v527_v23 = vadd.f32 %v935_v16, %v798_v18  ;;  %v535_v24 = vadd.f32 %v943_v17, %v798_v18 }
 0x121   : > { %v462_v19 = vpop.f32.mrf.mxu0  ;;  %v494_v20 = vpop.f32.mrf.mxu1 }
 0x122   : > { %v525_v27 = vadd.f32 %v798_v18, %v462_v19  ;;  %v533_v28 = vadd.f32 %v798_v18, %v494_v20 }
 0x123   : > { %v936_v21 = vpop.f32.mrf.mxu0  ;;  %v944_v22 = vpop.f32.mrf.mxu1 }
 0x124   : > { %v528_v25 = vadd.f32 %v936_v21, %v798_v18  ;;  %v536_v26 = vadd.f32 %v944_v22, %v798_v18 }
 0x125   : > { %v465_v29 = vpop.f32.mrf.mxu0  ;;  %v497_v30 = vpop.f32.mrf.mxu1 }
 0x126   : > { %v862_v31 = vpack.c.bf16 %v528_v25, %v527_v23  ;;  %v882_v32 = vpack.c.bf16 %v536_v26, %v535_v24  ;;  %v526_v33 = vadd.f32 %v798_v18, %v465_v29  ;;  %v534_v34 = vadd.f32 %v798_v18, %v497_v30 }
 0x127   : > { %v939_v35 = vpop.f32.mrf.mxu0  ;;  %v947_v36 = vpop.f32.mrf.mxu1 }
 0x128   : > { %894 = vst [vmem:[%s1375_s24 + $0x8] sm:$0xff] %v862_v31   ;;  %898 = vst [vmem:[%s1375_s24 + $0x28] sm:$0xff] %v882_v32   ;;  %v857_v37 = vpack.c.bf16 %v526_v33, %v525_v27  ;;  %v877_v38 = vpack.c.bf16 %v534_v34, %v533_v28  ;;  %v531_v43 = vadd.f32 %v939_v35, %v798_v18 }
 0x129   : > { %v478_v39 = vpop.f32.mrf.mxu0  ;;  %v510_v40 = vpop.f32.mrf.mxu1  ;;  %v539_v44 = vadd.f32 %v947_v36, %v798_v18 }
 0x12a   : > { %858 = vst [vmem:[%s1375_s24] sm:$0xff] %v857_v37   ;;  %897 = vst [vmem:[%s1375_s24 + $0x20] sm:$0xff] %v877_v38   ;;  %v529_v47 = vadd.f32 %v798_v18, %v478_v39  ;;  %v537_v48 = vadd.f32 %v798_v18, %v510_v40 }
 0x12b   : > { %v940_v41 = vpop.f32.mrf.mxu0  ;;  %v948_v42 = vpop.f32.mrf.mxu1 }
 0x12c   : > { %v532_v45 = vadd.f32 %v940_v41, %v798_v18  ;;  %v540_v46 = vadd.f32 %v948_v42, %v798_v18 }
 0x12d   : > { %v481_v49 = vpop.f32.mrf.mxu0  ;;  %v513_v50 = vpop.f32.mrf.mxu1 }
 0x12e   : > { %v872_v51 = vpack.c.bf16 %v532_v45, %v531_v43  ;;  %v892_v52 = vpack.c.bf16 %v540_v46, %v539_v44  ;;  %v530_v53 = vadd.f32 %v798_v18, %v481_v49  ;;  %v538_v54 = vadd.f32 %v798_v18, %v513_v50 }
 0x130   : > { %896 = vst [vmem:[%s1375_s24 + $0x18] sm:$0xff] %v872_v51   ;;  %900 = vst [vmem:[%s1375_s24 + $0x38] sm:$0xff] %v892_v52   ;;  %v867_v55 = vpack.c.bf16 %v530_v53, %v529_v47  ;;  %v887_v56 = vpack.c.bf16 %v538_v54, %v537_v48 }
 0x132   : > { %895 = vst [vmem:[%s1375_s24 + $0x10] sm:$0xff] %v867_v55   ;;  %899 = vst [vmem:[%s1375_s24 + $0x30] sm:$0xff] %v887_v56  }
 0x133   : > { %1125 = shalt.err (!%p1122_p5)
}
 0x134   : > { %s1126_s18 = scalar_lea.hbm %s1388_s21, 1024  ;;  %s1130_s27 = scalar_lea.hbm %s1443_s3, 2048 }
 0x135   : > { %p1127_p7 = scmp.ne.s32.totalorder %s1388_s21, %s1126_s18  ;;  %p1131_p9 = scmp.lt.s32.totalorder %s1388_s21, %s1443_s3 }
 0x136   : > { %p1132_p11 = scmp.lt.s32.totalorder %s1130_s27, %s1126_s18 }
 0x137   : > { %p1128_p4 = pnand %p1127_p7, %p1315_p13 }
 0x138   : > { %p1133_p10 = por %p1132_p11, %p1131_p9 }
 0x139   : > { %p1129_p6 = pneg %p1128_p4 }
 0x13b   : > { %p1134_p1 = pnand %p1133_p10, %p1129_p6 }
 0x13d   : > { %1137 = shalt.err (!%p1134_p1)
}
 0x13e   : > { %s1203_s24 = smov 64   ;;  %s1204_s29 = smov 4  }
 0x13f   : > { %971 = dma.vmem_to_hbm [thread:$0]  (%p1315_p13), %s1383_s30, 1024, %s1388_s21, %s657_s15, %s1203_s24, %s1203_s24, %s1204_s29  }
 0x140 PF: > { %s686_s5 = sand.u32 1, %s1176_s12   ;;  %p1459_p8 = scmp.ne.s32.totalorder %s1450_s23, 0 }
 0x141   : > { %p1460_p12 = scmp.ge.s32.totalorder %s1196_s17, 2  ;;  %s687_s6 = scalar_lea.sflag [#allocation5], %s686_s5 }
 0x143   : > { %p982_p0 = pnand %p1460_p12, %p1459_p8 }
 0x145   : > { %p983_p2 = pneg %p982_p0 }
 0x147   : > { %1171 = dma.done.wait (%p983_p2), %s687_s6, 1024  }
 0x148   : > { %1173 = vsyncadd (%p983_p2), %s687_s6, 4294966272  ;;  %s20_s17 = sadd.s32 1, %s1196_s17   ;;  %s1461_s12 = smov %s1180_s13 }
 0x149   : > { %p17_p3 = scmp.ge.s32.totalorder %s20_s17, 4   ;;  %s1462_s13 = smov %s1184_s14 }
 0x14a   : > { %s1463_s14 = smov %s1324_s19  ;;  %s1464_s15 = smov %s1192_s16 }
 0x14b   : > { %s1465_s16 = smov %s1467_s28  ;;  %19 = sbr.rel (!%p17_p3) target bundleno = 7 (0x7), region = 93 }
 0x150   :  { %692 = vsyncpa [#allocation4], 1 }
 0x151   :  { %694 = vsyncpa [#allocation4 + $0x1], 1 }
 0x152   :  { %695 = vsyncpa [#allocation7], 1 }
 0x153   :  { %696 = vsyncpa [#allocation5], 1 }
 0x154   :  { %698 = vsyncpa [#allocation5 + $0x1], 1 }

</bundles_post_ra>
